<compile_context>
chip_gen: v6e
topology: v6e:2x2x1
jax: 0.10.0
libtpu: 0.0.40
codegen_flags: <defaults>
</compile_context>

<pallas_src>
import functools

import jax
import jax.numpy as jnp
from jax.experimental import pallas as pl
from jax.experimental.pallas import tpu as pltpu

BN_EPS = 1e-5          # module's mu/epsilon args are never passed to BatchNorm2d -> defaults
LANE = 128
VMEM_LIMIT = 48 * 1024 * 1024
f32 = jnp.float32
bf16 = jnp.bfloat16


# ----------------------------------------------------------------------------- helpers
def _round_up(x, m):
    return (x + m - 1) // m * m


def _pad2d(a, rows, cols):
    r, c = a.shape
    return jnp.pad(a, ((0, rows - r), (0, cols - c)))


def _pad1d(a, n):
    return jnp.pad(a, (0, n - a.shape[0]))


def _pick_tile(m, target=1024):
    """Largest divisor of m that is a multiple of 16 and <= target (fallback: m)."""
    best = None
    for d in range(16, min(m, target) + 1, 16):
        if m % d == 0:
            best = d
    return best if best is not None else m


# ----------------------------------------------------------------------------- kernels
def _expand_matmul_kernel(x_ref, w_ref, conv_ref, psum_ref, psq_ref):
    """1x1 expand conv as bf16 MXU matmul (f32 acc) + partial per-channel sum/sumsq."""
    conv = jnp.dot(x_ref[...], w_ref[...], preferred_element_type=jnp.float32)
    conv_ref[...] = conv.astype(conv_ref.dtype)
    s = jnp.sum(conv, axis=0, keepdims=True)
    q = jnp.sum(conv * conv, axis=0, keepdims=True)
    psum_ref[...] = jnp.broadcast_to(s, psum_ref.shape)   # partial block; row 0 read in XLA
    psq_ref[...] = jnp.broadcast_to(q, psq_ref.shape)


def _bn_relu6_depthwise_kernel(x_ref, scale_ref, shift_ref, w_ref,
                               conv_ref, psum_ref, psq_ref, pad_ref,
                               *, k, stride, pad, h, w, ho, wo):
    """Fused expand-BN + ReLU6 + depthwise KxK conv (VPU, channels on lanes) + partial stats."""
    # Expand BN (affine form precomputed in XLA) + ReLU6, fused — no h1 HBM round trip.
    hact = jnp.clip(x_ref[...].astype(jnp.float32) * scale_ref[...] + shift_ref[...], 0.0, 6.0)

    if pad > 0:
        # In-kernel halo: zero the padded VMEM scratch, write the activated interior.
        pad_ref[...] = jnp.zeros_like(pad_ref)
        pad_ref[pad:pad + h, pad:pad + w, :] = hact
        xp = pad_ref[...]
    else:
        xp = hact

    c = xp.shape[-1]
    acc = jnp.zeros((ho, wo, c), jnp.float32)
    for di in range(k):
        for dj in range(k):
            if stride == 1:
                win = jax.lax.slice(xp, (di, dj, 0), (di + ho, dj + wo, c))
            else:
                win = jax.lax.slice(
                    xp, (di, dj, 0),
                    (di + (ho - 1) * stride + 1, dj + (wo - 1) * stride + 1, c),
                    (stride, stride, 1))
            r = di * k + dj
            acc = acc + win * w_ref[r:r + 1, :]
    conv_ref[...] = acc.astype(conv_ref.dtype)

    flat = acc.reshape(ho * wo, c)
    s = jnp.sum(flat, axis=0, keepdims=True)
    q = jnp.sum(flat * flat, axis=0, keepdims=True)
    psum_ref[...] = jnp.broadcast_to(s, psum_ref.shape)
    psq_ref[...] = jnp.broadcast_to(q, psq_ref.shape)


def _bn_relu6_pointwise_kernel(x_ref, scale_ref, shift_ref, w_ref,
                               conv_ref, psum_ref, psq_ref):
    """Fused depthwise-BN + ReLU6 + pointwise 1x1 matmul + partial stats (also feeds SE pool)."""
    hact = jnp.clip(x_ref[...].astype(jnp.float32) * scale_ref[...] + shift_ref[...], 0.0, 6.0)
    conv = jnp.dot(hact.astype(w_ref.dtype), w_ref[...], preferred_element_type=jnp.float32)
    conv_ref[...] = conv.astype(conv_ref.dtype)
    s = jnp.sum(conv, axis=0, keepdims=True)
    q = jnp.sum(conv * conv, axis=0, keepdims=True)
    psum_ref[...] = jnp.broadcast_to(s, psum_ref.shape)
    psq_ref[...] = jnp.broadcast_to(q, psq_ref.shape)


def _bn_gate_residual_kernel(conv_ref, scale_ref, shift_ref, gate_ref, *rest, use_residual):
    """Pointwise BN (affine) + per-sample SE gate multiply + optional residual (streaming)."""
    if use_residual:
        idn_ref, o_ref = rest
    else:
        (o_ref,) = rest
    y = conv_ref[...].astype(jnp.float32) * scale_ref[...] + shift_ref[...]
    out = y * gate_ref[0:1, :]
    if use_residual:
        out = out + idn_ref[...]
    o_ref[...] = out


# ----------------------------------------------------------------------------- wrapper
def mbconv_eppga_forward(x, params, *, kernel, stride, expand_ratio, reduction_ratio):
    """MBConv_EPPGA forward. x: (N, Cin, H, W) float32 NCHW. Returns NCHW float32."""
    (expand_w, expand_g, expand_b,
     dw_w, dw_g, dw_b,
     pw_w, pw_g, pw_b,
     fc1_w, fc1_b, fc2_w, fc2_b) = params

    N, Cin, H, W = x.shape
    Cmid = Cin * expand_ratio
    F_out = pw_w.shape[0]
    R = max(F_out // reduction_ratio, 1)
    pad = (kernel - 1) // 2
    Ho = (H + 2 * pad - kernel) // stride + 1
    Wo = (W + 2 * pad - kernel) // stride + 1
    use_residual = (Cin == F_out) and (stride == 1)

    # Contraction dim only padded to bf16 sublane granularity; output dims lane-dense.
    Cin_p = max(_round_up(Cin, 16), 16)
    Cmid_p = _round_up(Cmid, LANE)
    F_p = _round_up(F_out, LANE)

    M1 = N * H * W
    HW = Ho * Wo
    M2 = N * HW
    TM1 = _pick_tile(M1)
    TM2 = _pick_tile(HW)          # divides HW -> every tile lies inside one sample
    G1 = M1 // TM1
    T2 = HW // TM2
    Hp, Wp = H + 2 * pad, W + 2 * pad

    # ---- layout / padding glue (plain JAX; one NCHW->NHWC transpose total). ----
    x_nhwc = jnp.transpose(x.astype(f32), (0, 2, 3, 1))                       # (N, H, W, Cin)
    x_flat = _pad2d(x_nhwc.reshape(M1, Cin), M1, Cin_p).astype(bf16)          # (M1, Cin_p)

    w1 = _pad2d(expand_w.reshape(Cmid, Cin).T.astype(f32), Cin_p, Cmid_p).astype(bf16)
    w_dw = _pad2d(dw_w.reshape(Cmid, kernel * kernel).T.astype(f32),
                  kernel * kernel, Cmid_p)                                    # (K*K, Cmid_p) f32
    w3 = _pad2d(pw_w.reshape(F_out, Cmid).T.astype(f32), Cmid_p, F_p).astype(bf16)

    g1 = _pad1d(expand_g.astype(f32), Cmid_p); b1 = _pad1d(expand_b.astype(f32), Cmid_p)
    g2 = _pad1d(dw_g.astype(f32), Cmid_p);     b2 = _pad1d(dw_b.astype(f32), Cmid_p)
    g3 = _pad1d(pw_g.astype(f32), F_p);        b3 = _pad1d(pw_b.astype(f32), F_p)

    def affine(psum, psq, gamma, beta, count):
        """Reduce partial stats (tiny XLA) and fold BN into a per-channel affine."""
        C = psum.shape[-1]
        s = psum[..., 0, :].reshape(-1, C).sum(axis=0)
        q = psq[..., 0, :].reshape(-1, C).sum(axis=0)
        mean = s / count
        var = q / count - mean * mean
        scale = jax.lax.rsqrt(var + BN_EPS) * gamma
        shift = beta - mean * scale
        return scale[None, :], shift[None, :]

    # ---- K1: expand 1x1 conv (matmul) + partial BN stats. ----
    conv1, ps1, pq1 = pl.pallas_call(
        _expand_matmul_kernel,
        grid=(G1,),
        in_specs=[
            pl.BlockSpec((TM1, Cin_p), lambda i: (i, 0)),
            pl.BlockSpec((Cin_p, Cmid_p), lambda i: (0, 0)),
        ],
        out_specs=[
            pl.BlockSpec((TM1, Cmid_p), lambda i: (i, 0)),
            pl.BlockSpec((None, 8, Cmid_p), lambda i: (i, 0, 0)),
            pl.BlockSpec((None, 8, Cmid_p), lambda i: (i, 0, 0)),
        ],
        out_shape=[
            jax.ShapeDtypeStruct((M1, Cmid_p), bf16),
            jax.ShapeDtypeStruct((G1, 8, Cmid_p), f32),
            jax.ShapeDtypeStruct((G1, 8, Cmid_p), f32),
        ],
        compiler_params=pltpu.CompilerParams(
            dimension_semantics=("parallel",), vmem_limit_bytes=VMEM_LIMIT),
        cost_estimate=pl.CostEstimate(
            flops=2 * M1 * Cin_p * Cmid_p, transcendentals=0,
            bytes_accessed=M1 * Cin_p * 2 + Cin_p * Cmid_p * 2 + M1 * Cmid_p * 2),
    )(x_flat, w1)

    scale1, shift1 = affine(ps1, pq1, g1, b1, M1)

    # ---- K3: fused expand-BN+ReLU6 + depthwise conv + partial BN stats (per sample). ----
    # TODO(synk): for large spatial shapes, tile this over output-row strips with halo
    # BlockSpecs (register-resident accumulator) instead of whole-sample blocks (v7x 64 MiB VMEM).
    conv1_nhwc = conv1.reshape(N, H, W, Cmid_p)
    conv2, ps2, pq2 = pl.pallas_call(
        functools.partial(_bn_relu6_depthwise_kernel, k=kernel, stride=stride,
                          pad=pad, h=H, w=W, ho=Ho, wo=Wo),
        grid=(N,),
        in_specs=[
            pl.BlockSpec((None, H, W, Cmid_p), lambda n: (n, 0, 0, 0)),
            pl.BlockSpec((1, Cmid_p), lambda n: (0, 0)),
            pl.BlockSpec((1, Cmid_p), lambda n: (0, 0)),
            pl.BlockSpec((kernel * kernel, Cmid_p), lambda n: (0, 0)),
        ],
        out_specs=[
            pl.BlockSpec((None, Ho, Wo, Cmid_p), lambda n: (n, 0, 0, 0)),
            pl.BlockSpec((None, 8, Cmid_p), lambda n: (n, 0, 0)),
            pl.BlockSpec((None, 8, Cmid_p), lambda n: (n, 0, 0)),
        ],
        out_shape=[
            jax.ShapeDtypeStruct((N, Ho, Wo, Cmid_p), bf16),
            jax.ShapeDtypeStruct((N, 8, Cmid_p), f32),
            jax.ShapeDtypeStruct((N, 8, Cmid_p), f32),
        ],
        scratch_shapes=[pltpu.VMEM((Hp, Wp, Cmid_p), f32)],
        compiler_params=pltpu.CompilerParams(
            dimension_semantics=("parallel",), vmem_limit_bytes=VMEM_LIMIT),
    )(conv1_nhwc, scale1, shift1, w_dw)

    scale2, shift2 = affine(ps2, pq2, g2, b2, M2)

    # ---- K4: depthwise-BN + ReLU6 + pointwise matmul + partial BN stats. ----
    conv2_flat = conv2.reshape(N, HW, Cmid_p)
    conv3, ps3, pq3 = pl.pallas_call(
        _bn_relu6_pointwise_kernel,
        grid=(N, T2),
        in_specs=[
            pl.BlockSpec((None, TM2, Cmid_p), lambda n, j: (n, j, 0)),
            pl.BlockSpec((1, Cmid_p), lambda n, j: (0, 0)),
            pl.BlockSpec((1, Cmid_p), lambda n, j: (0, 0)),
            pl.BlockSpec((Cmid_p, F_p), lambda n, j: (0, 0)),
        ],
        out_specs=[
            pl.BlockSpec((None, TM2, F_p), lambda n, j: (n, j, 0)),
            pl.BlockSpec((None, None, 8, F_p), lambda n, j: (n, j, 0, 0)),
            pl.BlockSpec((None, None, 8, F_p), lambda n, j: (n, j, 0, 0)),
        ],
        out_shape=[
            jax.ShapeDtypeStruct((N, HW, F_p), bf16),
            jax.ShapeDtypeStruct((N, T2, 8, F_p), f32),
            jax.ShapeDtypeStruct((N, T2, 8, F_p), f32),
        ],
        compiler_params=pltpu.CompilerParams(
            dimension_semantics=("parallel", "parallel"), vmem_limit_bytes=VMEM_LIMIT),
        cost_estimate=pl.CostEstimate(
            flops=2 * M2 * Cmid_p * F_p, transcendentals=0,
            bytes_accessed=M2 * Cmid_p * 2 + Cmid_p * F_p * 2 + M2 * F_p * 2),
    )(conv2_flat, scale2, shift2, w3)

    scale3, shift3 = affine(ps3, pq3, g3, b3, M2)

    # ---- SE gate (tiny per-sample math in XLA; BN is affine so the pool commutes). ----
    per_sample_mean = ps3[:, :, 0, :].sum(axis=1) / HW                 # (N, F_p): mean of conv3
    pooled = (per_sample_mean * scale3 + shift3)[:, :F_out]            # BN3 pulled through mean
    z = jnp.maximum(pooled @ fc1_w.reshape(R, F_out).T.astype(f32) + fc1_b.astype(f32), 0.0)
    gate = jax.nn.sigmoid(z @ fc2_w.reshape(F_out, R).T.astype(f32) + fc2_b.astype(f32))
    gate8 = jnp.broadcast_to(
        jnp.pad(gate, ((0, 0), (0, F_p - F_out)))[:, None, :], (N, 8, F_p))

    # ---- K5: pointwise-BN + SE gate + residual as a pure streaming pass. ----
    k5_inputs = [conv3, scale3, shift3, gate8]
    k5_specs = [
        pl.BlockSpec((None, TM2, F_p), lambda n, j: (n, j, 0)),
        pl.BlockSpec((1, F_p), lambda n, j: (0, 0)),
        pl.BlockSpec((1, F_p), lambda n, j: (0, 0)),
        pl.BlockSpec((None, 8, F_p), lambda n, j: (n, 0, 0)),
    ]
    if use_residual:
        identity = _pad2d(x_nhwc.reshape(M1, Cin), M1, F_p).reshape(N, HW, F_p)
        k5_inputs.append(identity)
        k5_specs.append(pl.BlockSpec((None, TM2, F_p), lambda n, j: (n, j, 0)))

    out_nhwc = pl.pallas_call(
        functools.partial(_bn_gate_residual_kernel, use_residual=use_residual),
        grid=(N, T2),
        in_specs=k5_specs,
        out_specs=pl.BlockSpec((None, TM2, F_p), lambda n, j: (n, j, 0)),
        out_shape=jax.ShapeDtypeStruct((N, HW, F_p), f32),
        compiler_params=pltpu.CompilerParams(
            dimension_semantics=("parallel", "parallel"), vmem_limit_bytes=VMEM_LIMIT),
    )(*k5_inputs)

    out = out_nhwc[:, :, :F_out].reshape(N, Ho, Wo, F_out)
    return jnp.transpose(out, (0, 3, 1, 2))


# ----------------------------------------------------------------------------- reference
def _reference_forward(x, params, *, kernel, stride, expand_ratio, reduction_ratio):
    """Pure-JAX f32 reference (NCHW), matching the PyTorch module in training mode."""
    (expand_w, expand_g, expand_b, dw_w, dw_g, dw_b,
     pw_w, pw_g, pw_b, fc1_w, fc1_b, fc2_w, fc2_b) = params
    x = x.astype(f32)
    N, Cin, H, W = x.shape
    Cmid = Cin * expand_ratio
    F_out = pw_w.shape[0]
    pad = (kernel - 1) // 2

    def bn(v, g, b):
        mean = jnp.mean(v, axis=(0, 2, 3), keepdims=True)
        var = jnp.mean((v - mean) ** 2, axis=(0, 2, 3), keepdims=True)
        return ((v - mean) * jax.lax.rsqrt(var + BN_EPS)
                * g.reshape(1, -1, 1, 1) + b.reshape(1, -1, 1, 1))

    relu6 = lambda v: jnp.clip(v, 0.0, 6.0)
    dn = ("NCHW", "OIHW", "NCHW")

    out = jax.lax.conv_general_dilated(x, expand_w.astype(f32), (1, 1),
                                       [(0, 0), (0, 0)], dimension_numbers=dn)
    out = relu6(bn(out, expand_g, expand_b))
    out = jax.lax.conv_general_dilated(out, dw_w.astype(f32), (stride, stride),
                                       [(pad, pad), (pad, pad)], dimension_numbers=dn,
                                       feature_group_count=Cmid)
    out = relu6(bn(out, dw_g, dw_b))
    out = jax.lax.conv_general_dilated(out, pw_w.astype(f32), (1, 1),
                                       [(0, 0), (0, 0)], dimension_numbers=dn)
    out = bn(out, pw_g, pw_b)

    pooled = jnp.mean(out, axis=(2, 3))                                   # (N, F)
    z = jnp.maximum(pooled @ fc1_w.reshape(-1, F_out).T + fc1_b, 0.0)
    s = jax.nn.sigmoid(z @ fc2_w.reshape(F_out, -1).T + fc2_b)
    out = out * s[:, :, None, None]
    if Cin == F_out and stride == 1:
        out = out + x
    return out


# ----------------------------------------------------------------------------- demo
if __name__ == "__main__":
    KERNEL = 3
    IN_CH = 8
    FILTERS = 8
    STRIDE = 1
    EXPAND_RATIO = 6
    REDUCTION_RATIO = 4            # FILTERS // REDUCTION_RATIO must be >= 1

    N, H, W = 2, 16, 16
    Cmid = IN_CH * EXPAND_RATIO
    R = FILTERS // REDUCTION_RATIO

    key = jax.random.PRNGKey(0)
    keys = jax.random.split(key, 12)

    def kaiming(k, shape):
        fan_in = 1
        for d in shape[1:]:
            fan_in *= d
        return jax.random.normal(k, shape, dtype=jnp.float32) * jnp.sqrt(2.0 / fan_in)

    x = jax.random.normal(keys[0], (N, IN_CH, H, W), dtype=jnp.float32)

    expand_w = kaiming(keys[1], (Cmid, IN_CH, 1, 1))
    dw_w = kaiming(keys[2], (Cmid, 1, KERNEL, KERNEL))
    pw_w = kaiming(keys[3], (FILTERS, Cmid, 1, 1))
    fc1_w = kaiming(keys[4], (R, FILTERS, 1, 1))
    fc2_w = kaiming(keys[5], (FILTERS, R, 1, 1))
    fc1_b = 0.1 * jax.random.normal(keys[6], (R,), dtype=jnp.float32)
    fc2_b = 0.1 * jax.random.normal(keys[7], (FILTERS,), dtype=jnp.float32)
    # BatchNorm affine params (perturbed from 1/0 defaults to exercise the math).
    expand_g = 1.0 + 0.1 * jax.random.normal(keys[8], (Cmid,), dtype=jnp.float32)
    expand_b = 0.1 * jax.random.normal(keys[9], (Cmid,), dtype=jnp.float32)
    dw_g = 1.0 + 0.1 * jax.random.normal(keys[10], (Cmid,), dtype=jnp.float32)
    dw_b = 0.1 * jax.random.normal(keys[11], (Cmid,), dtype=jnp.float32)
    pw_g = jnp.ones((FILTERS,), dtype=jnp.float32)
    pw_b = jnp.zeros((FILTERS,), dtype=jnp.float32)

    params = (expand_w, expand_g, expand_b, dw_w, dw_g, dw_b,
              pw_w, pw_g, pw_b, fc1_w, fc1_b, fc2_w, fc2_b)

    out = mbconv_eppga_forward(
        x, params, kernel=KERNEL, stride=STRIDE,
        expand_ratio=EXPAND_RATIO, reduction_ratio=REDUCTION_RATIO)
    out = jax.block_until_ready(out)

    ref = _reference_forward(
        x, params, kernel=KERNEL, stride=STRIDE,
        expand_ratio=EXPAND_RATIO, reduction_ratio=REDUCTION_RATIO)

    assert out.shape == (N, FILTERS, H, W), out.shape
    # Tolerance reflects bf16 MXU inputs + bf16 intermediate storage (f32 stats & BN math).
    max_err = float(jnp.max(jnp.abs(out - ref)))
    assert jnp.allclose(out, ref, atol=5e-2, rtol=5e-2), max_err

    print("KERNEL_OK")
</pallas_src>

<mosaic_0001>
module attributes {stable_mosaic.version = 11 : i64} {
  func.func @_expand_matmul_kernel(%arg0: i32, %arg1: memref<512x16xbf16, #tpu.memory_space<vmem>>, %arg2: memref<16x128xbf16, #tpu.memory_space<vmem>>, %arg3: memref<512x128xbf16, #tpu.memory_space<vmem>>, %arg4: memref<1x8x128xf32, #tpu.memory_space<vmem>>, %arg5: memref<1x8x128xf32, #tpu.memory_space<vmem>>) attributes {dimension_semantics = [#tpu.dimension_semantics<parallel>], iteration_bounds = array<i64: 1>, scalar_prefetch = 0 : i64, scratch_operands = 0 : i64, tpu.core_type = #tpu.core_type<tc>, window_params = [{transform_indices = @transform_0, window_bounds = array<i64: 512, 16>}, {pipeline_mode = #tpu.pipeline_mode<synchronous>, transform_indices = @transform_1, window_bounds = array<i64: 16, 128>}, {transform_indices = @transform_2, window_bounds = array<i64: 512, 128>}, {transform_indices = @transform_3, window_bounds = array<i64: 1, 8, 128>}, {transform_indices = @transform_4, window_bounds = array<i64: 1, 8, 128>}]} {
    %c0 = arith.constant 0 : index
    %c0_0 = arith.constant 0 : index
    %0 = vector.load %arg1[%c0, %c0_0] : memref<512x16xbf16, #tpu.memory_space<vmem>>, vector<512x16xbf16>
    %c0_1 = arith.constant 0 : index
    %c0_2 = arith.constant 0 : index
    %1 = vector.load %arg2[%c0_1, %c0_2] : memref<16x128xbf16, #tpu.memory_space<vmem>>, vector<16x128xbf16>
    %cst = arith.constant dense<0.000000e+00> : vector<512x128xf32>
    %2 = tpu.matmul %0, %1, %cst {dimension_numbers = #tpu.dot_dimension_numbers<[1], [0], [0], [1], [0, 0, 1, 1], [], []>} : vector<512x16xbf16>, vector<16x128xbf16>, vector<512x128xf32> -> vector<512x128xf32>
    %3 = arith.truncf %2 : vector<512x128xf32> to vector<512x128xbf16>
    %c0_3 = arith.constant 0 : index
    %c0_4 = arith.constant 0 : index
    %4 = vector.load %arg3[%c0_3, %c0_4] : memref<512x128xbf16, #tpu.memory_space<vmem>>, vector<512x128xbf16>
    tpu.vector_store %arg3[%c0_3, %c0_4], %3 {strides = array<i32>} : memref<512x128xbf16, #tpu.memory_space<vmem>>, vector<512x128xbf16>,
    %cst_5 = arith.constant dense<0.000000e+00> : vector<128xf32>
    %5 = vector.multi_reduction <add>, %2, %cst_5 [0] : vector<512x128xf32> to vector<128xf32>
    %6 = vector.shape_cast %5 : vector<128xf32> to vector<1x128xf32>
    %7 = arith.mulf %2, %2 : vector<512x128xf32>
    %cst_6 = arith.constant dense<0.000000e+00> : vector<128xf32>
    %8 = vector.multi_reduction <add>, %7, %cst_6 [0] : vector<512x128xf32> to vector<128xf32>
    %9 = vector.shape_cast %8 : vector<128xf32> to vector<1x128xf32>
    %10 = vector.shape_cast %6 : vector<1x128xf32> to vector<1x128xf32>
    %11 = vector.broadcast %10 : vector<1x128xf32> to vector<8x128xf32>
    %c0_7 = arith.constant 0 : index
    %c0_8 = arith.constant 0 : index
    %c0_9 = arith.constant 0 : index
    %12 = vector.load %arg4[%c0_7, %c0_8, %c0_9] : memref<1x8x128xf32, #tpu.memory_space<vmem>>, vector<1x8x128xf32>
    %13 = vector.shape_cast %12 : vector<1x8x128xf32> to vector<8x128xf32>
    %14 = vector.shape_cast %11 : vector<8x128xf32> to vector<1x8x128xf32>
    tpu.vector_store %arg4[%c0_7, %c0_8, %c0_9], %14 {strides = array<i32>} : memref<1x8x128xf32, #tpu.memory_space<vmem>>, vector<1x8x128xf32>,
    %15 = vector.shape_cast %9 : vector<1x128xf32> to vector<1x128xf32>
    %16 = vector.broadcast %15 : vector<1x128xf32> to vector<8x128xf32>
    %c0_10 = arith.constant 0 : index
    %c0_11 = arith.constant 0 : index
    %c0_12 = arith.constant 0 : index
    %17 = vector.load %arg5[%c0_10, %c0_11, %c0_12] : memref<1x8x128xf32, #tpu.memory_space<vmem>>, vector<1x8x128xf32>
    %18 = vector.shape_cast %17 : vector<1x8x128xf32> to vector<8x128xf32>
    %19 = vector.shape_cast %16 : vector<8x128xf32> to vector<1x8x128xf32>
    tpu.vector_store %arg5[%c0_10, %c0_11, %c0_12], %19 {strides = array<i32>} : memref<1x8x128xf32, #tpu.memory_space<vmem>>, vector<1x8x128xf32>,
    return
  }
  func.func @transform_0(%arg0: i32) -> (i32, i32) {
    %c0_i32 = arith.constant 0 : i32
    %c0_i32_0 = arith.constant 0 : i32
    return %arg0, %c0_i32 : i32, i32
  }
  func.func @transform_1(%arg0: i32) -> (i32, i32) {
    %c0_i32 = arith.constant 0 : i32
    %c0_i32_0 = arith.constant 0 : i32
    %c0_i32_1 = arith.constant 0 : i32
    return %c0_i32, %c0_i32_0 : i32, i32
  }
  func.func @transform_2(%arg0: i32) -> (i32, i32) {
    %c0_i32 = arith.constant 0 : i32
    %c0_i32_0 = arith.constant 0 : i32
    return %arg0, %c0_i32 : i32, i32
  }
  func.func @transform_3(%arg0: i32) -> (i32, i32, i32) {
    %c0_i32 = arith.constant 0 : i32
    %c0_i32_0 = arith.constant 0 : i32
    %c0_i32_1 = arith.constant 0 : i32
    return %arg0, %c0_i32, %c0_i32_0 : i32, i32, i32
  }
  func.func @transform_4(%arg0: i32) -> (i32, i32, i32) {
    %c0_i32 = arith.constant 0 : i32
    %c0_i32_0 = arith.constant 0 : i32
    %c0_i32_1 = arith.constant 0 : i32
    return %arg0, %c0_i32, %c0_i32_0 : i32, i32, i32
  }
}

</mosaic_0001>

<bundles_post_ra>
// kernel: tpu_custom_call.1
= control target key start
LH: loop header
LB: loop body
LE: loop exit
PB: predicated region body
PF: predicated region fallthrough
CT: control target
= control target key end

     0   :  { %10 = vsyncpa [#allocation3], 0  ;;  %vm249_vm0 = vcmask 130048   ;;  %s2151_s0 = inlined_call_operand.vmem [shape: bf16[512,16], index: 0, kind: input, shape index: {}]   ;;  %s2152_s1 = inlined_call_operand.vmem [shape: bf16[16,128], index: 1, kind: input, shape index: {}]   ;;  %s2153_s2 = inlined_call_operand.hbm [shape: bf16[512,128], index: 2, kind: output, shape index: {0}]   ;;  %s2154_s3 = inlined_call_operand.hbm [shape: f32[1,8,128], index: 3, kind: output, shape index: {1}]   ;;  %s2155_s4 = inlined_call_operand.hbm [shape: f32[1,8,128], index: 4, kind: output, shape index: {2}]  }
   0x1   :  { %v1692_v0 = vld [vmem:[%s2152_s1] sm:$0xff]   ;;  %v1694_v2 = vld [vmem:[%s2151_s0 + $0x8] sm:$0xff]   ;;  %v1695_v3 = vld [vmem:[%s2151_s0 + $0x10] sm:$0xff]  }
   0x2   :  { %v1693_v1 = vld [vmem:[%s2151_s0] sm:$0xff]   ;;  %1619 = vmatprep.subr.bf16.mxu0 %v1692_v0  ;;  %1685 = vmatprep.subr.bf16.mxu1 %v1692_v0  ;;  %v1696_v4 = vld [vmem:[%s2151_s0 + $0x18] sm:$0xff]   ;;  %v1698_v6 = vld [vmem:[%s2151_s0 + $0x28] sm:$0xff]  }
   0x3   :  { %1620 = vmatpush3.bf16.msra.mxu0 %v1692_v0  ;;  %1621 = vmatprep.mubr.msk.bf16.mxu0 %vm249_vm0, %v1693_v1  ;;  %v1697_v5 = vld [vmem:[%s2151_s0 + $0x20] sm:$0xff]   ;;  %v1699_v7 = vld [vmem:[%s2151_s0 + $0x30] sm:$0xff]   ;;  %v1710_v9 = vld [vmem:[%s2151_s0 + $0x88] sm:$0xff]  }
   0x4   :  { %1686 = vmatpush3.bf16.msra.mxu1 %v1692_v0  ;;  %v1709_v8 = vld [vmem:[%s2151_s0 + $0x80] sm:$0xff]   ;;  %v1711_v10 = vld [vmem:[%s2151_s0 + $0x90] sm:$0xff]   ;;  %v1712_v11 = vld [vmem:[%s2151_s0 + $0x98] sm:$0xff]  }
   0x5   :  { %1653 = vmatprep.mubr.msk.bf16.mxu1 %vm249_vm0, %v1709_v8  ;;  %v1713_v12 = vld [vmem:[%s2151_s0 + $0xa0] sm:$0xff]   ;;  %v1700_v13 = vld [vmem:[%s2151_s0 + $0x38] sm:$0xff]   ;;  %v1714_v15 = vld [vmem:[%s2151_s0 + $0xa8] sm:$0xff]  }
   0x6   :  { %1622 = vmatmul.mubr.msk.bf16.vlgmr.msra.gmra.mxu0 %vm249_vm0, %v1694_v2  ;;  %v1701_v14 = vld [vmem:[%s2151_s0 + $0x40] sm:$0xff]   ;;  %v1715_v16 = vld [vmem:[%s2151_s0 + $0xb0] sm:$0xff]  }
   0x7   :  { %1625 = vmatprep.mubr.msk.bf16.mxu0 %vm249_vm0, %v1695_v3  ;;  %1654 = vmatmul.mubr.msk.bf16.vlgmr.msra.gmra.mxu1 %vm249_vm0, %v1710_v9 }
   0x8   :  { %1657 = vmatprep.mubr.msk.bf16.mxu1 %vm249_vm0, %v1711_v10 }
   0xe   :  { %1626 = vmatmul.mubr.msk.bf16.gmra.mxu0 %vm249_vm0, %v1696_v4 }
   0xf   :  { %1629 = vmatprep.mubr.msk.bf16.mxu0 %vm249_vm0, %v1697_v5  ;;  %1658 = vmatmul.mubr.msk.bf16.gmra.mxu1 %vm249_vm0, %v1712_v11 }
  0x10   :  { %1661 = vmatprep.mubr.msk.bf16.mxu1 %vm249_vm0, %v1713_v12 }
  0x16   :  { %1630 = vmatmul.mubr.msk.bf16.gmra.mxu0 %vm249_vm0, %v1698_v6 }
  0x17   :  { %1633 = vmatprep.mubr.msk.bf16.mxu0 %vm249_vm0, %v1699_v7 }
  0x1e   :  { %1634 = vmatmul.mubr.msk.bf16.gmra.mxu0 %vm249_vm0, %v1700_v13 }
  0x1f   :  { %1637 = vmatprep.mubr.msk.bf16.mxu0 %vm249_vm0, %v1701_v14 }
  0x20   :  { %11 = vsyncpa [#allocation5], 0  ;;  %v1702_v17 = vld [vmem:[%s2151_s0 + $0x48] sm:$0xff]   ;;  %v1703_v18 = vld [vmem:[%s2151_s0 + $0x50] sm:$0xff]   ;;  %1662 = vmatmul.mubr.msk.bf16.gmra.mxu1 %vm249_vm0, %v1714_v15 }
  0x21   :  { %1665 = vmatprep.mubr.msk.bf16.mxu1 %vm249_vm0, %v1715_v16  ;;  %v1716_v19 = vld [vmem:[%s2151_s0 + $0xb8] sm:$0xff]   ;;  %v1717_v20 = vld [vmem:[%s2151_s0 + $0xc0] sm:$0xff]   ;;  %v1718_v23 = vld [vmem:[%s2151_s0 + $0xc8] sm:$0xff]  }
  0x22   :  { %v1704_v21 = vld [vmem:[%s2151_s0 + $0x58] sm:$0xff]   ;;  %v1705_v22 = vld [vmem:[%s2151_s0 + $0x60] sm:$0xff]   ;;  %v1719_v24 = vld [vmem:[%s2151_s0 + $0xd0] sm:$0xff]  }
  0x23   :  { %v1706_v25 = vld [vmem:[%s2151_s0 + $0x68] sm:$0xff]   ;;  %v1707_v26 = vld [vmem:[%s2151_s0 + $0x70] sm:$0xff]   ;;  %v1720_v27 = vld [vmem:[%s2151_s0 + $0xd8] sm:$0xff]  }
  0x24   :  { %v1721_v28 = vld [vmem:[%s2151_s0 + $0xe0] sm:$0xff]   ;;  %v1708_v29 = vld [vmem:[%s2151_s0 + $0x78] sm:$0xff]   ;;  %v1722_v30 = vld [vmem:[%s2151_s0 + $0xe8] sm:$0xff]  }
  0x25   :  { %v1723_v31 = vld [vmem:[%s2151_s0 + $0xf0] sm:$0xff]   ;;  %v1724_v32 = vld [vmem:[%s2151_s0 + $0xf8] sm:$0xff]   ;;  %s1789_s0 = smov [#allocation2]  }
  0x26   :  { %1638 = vmatmul.mubr.msk.bf16.gmra.mxu0 %vm249_vm0, %v1702_v17  ;;  %s1164_s26 = sshll.u32 %s1789_s0, 4  ;;  %s1165_s26 = int_to_ptr.vmem [resolvable:$true] %s1164_s26 }
  0x27   :  { %1641 = vmatprep.mubr.msk.bf16.mxu0 %vm249_vm0, %v1703_v18  ;;  %s1725_s27 = scalar_lea.vmem %s1165_s26, 4096  ;;  %p1730_p1 = scmp.lt.s32.totalorder %s1165_s26, %s1165_s26 }
  0x28   :  { %1666 = vmatmul.mubr.msk.bf16.gmra.mxu1 %vm249_vm0, %v1716_v19  ;;  %p1726_p0 = scmp.ne.s32.totalorder %s1165_s26, %s1725_s27  ;;  %p1731_p2 = scmp.lt.s32.totalorder %s1725_s27, %s1725_s27 }
  0x29   :  { %1669 = vmatprep.mubr.msk.bf16.mxu1 %vm249_vm0, %v1717_v20 }
  0x2a   :  { %p1732_p3 = por %p1731_p2, %p1730_p1 }
  0x2c   :  { %p1733_p4 = pnand %p1732_p3, %p1726_p0 }
  0x2e   :  { %1642 = vmatmul.mubr.msk.bf16.gmra.mxu0 %vm249_vm0, %v1704_v21 }
  0x2f   :  { %1645 = vmatprep.mubr.msk.bf16.mxu0 %vm249_vm0, %v1705_v22 }
  0x30   :  { %1670 = vmatmul.mubr.msk.bf16.gmra.mxu1 %vm249_vm0, %v1718_v23 }
  0x31   :  { %1673 = vmatprep.mubr.msk.bf16.mxu1 %vm249_vm0, %v1719_v24 }
  0x36   :  { %1646 = vmatmul.mubr.msk.bf16.gmra.mxu0 %vm249_vm0, %v1706_v25 }
  0x37   :  { %1649 = vmatprep.mubr.msk.bf16.mxu0 %vm249_vm0, %v1707_v26 }
  0x38   :  { %1674 = vmatmul.mubr.msk.bf16.gmra.mxu1 %vm249_vm0, %v1720_v27 }
  0x39   :  { %1677 = vmatprep.mubr.msk.bf16.mxu1 %vm249_vm0, %v1721_v28 }
  0x3e   :  { %1650 = vmatmul.mubr.msk.bf16.gmra.mxu0 %vm249_vm0, %v1708_v29 }
  0x40   :  { %1678 = vmatmul.mubr.msk.bf16.gmra.mxu1 %vm249_vm0, %v1722_v30 }
  0x41   :  { %1681 = vmatprep.mubr.msk.bf16.mxu1 %vm249_vm0, %v1723_v31 }
  0x48   :  { %1682 = vmatmul.mubr.msk.bf16.gmra.mxu1 %vm249_vm0, %v1724_v32 }
  0xc6   :  { %v1623_v33 = vpop.f32.mrf.mxu0 }
  0xc7   :  { %v1026_v43 = vmul.f32 %v1623_v33, %v1623_v33  ;;  %v1950_v56 = vpop.f32.mrf.mxu1 }
  0xc8   :  { %v380_v34 = vpop.f32.mrf.mxu0 }
  0xc9   :  { %v1024_v38 = vmul.f32 %v380_v34, %v380_v34  ;;  %v1952_v62 = vpop.f32.mrf.mxu1 }
  0xca   :  { %v1624_v35 = vpop.f32.mrf.mxu0 }
  0xcb   :  { %v1403_v36 = vpack.c.bf16 %v1624_v35, %v1623_v33  ;;  %v1027_v47 = vmul.f32 %v1624_v35, %v1624_v35  ;;  %v1954_v3 = vpop.f32.mrf.mxu1 }
  0xcc   :  { %v383_v37 = vpop.f32.mrf.mxu0  ;;  %v1483_v7 = vpack.c.bf16 %v1954_v3, %v1950_v56 }
  0xcd   :  { %1555 = vst [vmem:[#allocation2 + $0x8] sm:$0xff] %v1403_v36   ;;  %v1398_v39 = vpack.c.bf16 %v383_v37, %v380_v34  ;;  %v955_v40 = vadd.f32 %v383_v37, %v380_v34  ;;  %v1025_v41 = vmul.f32 %v383_v37, %v383_v37  ;;  %v1958_v9 = vpop.f32.mrf.mxu1 }
  0xce   :  { %v1627_v42 = vpop.f32.mrf.mxu0  ;;  %1571 = vst [vmem:[#allocation2 + $0x88] sm:$0xff] %v1483_v7   ;;  %v1478_v15 = vpack.c.bf16 %v1958_v9, %v1952_v62 }
  0xcf   :  { %1399 = vst [vmem:[#allocation2] sm:$0xff] %v1398_v39   ;;  %v956_v44 = vadd.f32 %v1623_v33, %v955_v40  ;;  %v1088_v45 = vadd.f32 %v1025_v41, %v1024_v38  ;;  %v1030_v63 = vmul.f32 %v1627_v42, %v1627_v42  ;;  %v1962_v16 = vpop.f32.mrf.mxu1 }
  0xd0   :  { %v396_v46 = vpop.f32.mrf.mxu0  ;;  %1570 = vst [vmem:[#allocation2 + $0x80] sm:$0xff] %v1478_v15  }
  0xd1   :  { %v1089_v48 = vadd.f32 %v1088_v45, %v1026_v43  ;;  %v957_v49 = vadd.f32 %v1624_v35, %v956_v44  ;;  %v1028_v52 = vmul.f32 %v396_v46, %v396_v46  ;;  %v1964_v22 = vpop.f32.mrf.mxu1 }
  0xd2   :  { %v1628_v50 = vpop.f32.mrf.mxu0 }
  0xd3   :  { %v958_v51 = vadd.f32 %v957_v49, %v396_v46  ;;  %v1090_v53 = vadd.f32 %v1089_v48, %v1027_v47  ;;  %v1413_v54 = vpack.c.bf16 %v1628_v50, %v1627_v42  ;;  %v1031_v4 = vmul.f32 %v1628_v50, %v1628_v50  ;;  %v1966_v27 = vpop.f32.mrf.mxu1 }
  0xd4   :  { %v399_v55 = vpop.f32.mrf.mxu0  ;;  %v1493_v31 = vpack.c.bf16 %v1966_v27, %v1962_v16 }
  0xd5   :  { %v1091_v57 = vadd.f32 %v1090_v53, %v1028_v52  ;;  %1557 = vst [vmem:[#allocation2 + $0x18] sm:$0xff] %v1413_v54   ;;  %v1408_v58 = vpack.c.bf16 %v399_v55, %v396_v46  ;;  %v959_v59 = vadd.f32 %v958_v51, %v399_v55  ;;  %v1029_v60 = vmul.f32 %v399_v55, %v399_v55  ;;  %v1970_v33 = vpop.f32.mrf.mxu1 }
  0xd6   :  { %v1631_v61 = vpop.f32.mrf.mxu0  ;;  %1573 = vst [vmem:[#allocation2 + $0x98] sm:$0xff] %v1493_v31   ;;  %v1488_v39 = vpack.c.bf16 %v1970_v33, %v1964_v22 }
  0xd7   :  { %1556 = vst [vmem:[#allocation2 + $0x10] sm:$0xff] %v1408_v58   ;;  %v960_v0 = vadd.f32 %v1627_v42, %v959_v59  ;;  %v1092_v1 = vadd.f32 %v1091_v57, %v1029_v60  ;;  %v1034_v23 = vmul.f32 %v1631_v61, %v1631_v61 }
  0xd8   :  { %v412_v2 = vpop.f32.mrf.mxu0  ;;  %1572 = vst [vmem:[#allocation2 + $0x90] sm:$0xff] %v1488_v39  }
  0xd9   :  { %v1093_v5 = vadd.f32 %v1092_v1, %v1030_v63  ;;  %v961_v6 = vadd.f32 %v1628_v50, %v960_v0  ;;  %v1032_v11 = vmul.f32 %v412_v2, %v412_v2 }
  0xda   :  { %v1632_v8 = vpop.f32.mrf.mxu0 }
  0xdb   :  { %v962_v10 = vadd.f32 %v961_v6, %v412_v2  ;;  %v1094_v12 = vadd.f32 %v1093_v5, %v1031_v4  ;;  %v1423_v13 = vpack.c.bf16 %v1632_v8, %v1631_v61  ;;  %v1035_v28 = vmul.f32 %v1632_v8, %v1632_v8 }
  0xdc   :  { %v415_v14 = vpop.f32.mrf.mxu0 }
  0xdd   :  { %v1095_v17 = vadd.f32 %v1094_v12, %v1032_v11  ;;  %1559 = vst [vmem:[#allocation2 + $0x28] sm:$0xff] %v1423_v13   ;;  %v1418_v18 = vpack.c.bf16 %v415_v14, %v412_v2  ;;  %v963_v19 = vadd.f32 %v962_v10, %v415_v14  ;;  %v1033_v20 = vmul.f32 %v415_v14, %v415_v14 }
  0xde   :  { %v1635_v21 = vpop.f32.mrf.mxu0 }
  0xdf   :  { %1558 = vst [vmem:[#allocation2 + $0x20] sm:$0xff] %v1418_v18   ;;  %v964_v24 = vadd.f32 %v1631_v61, %v963_v19  ;;  %v1096_v25 = vadd.f32 %v1095_v17, %v1033_v20  ;;  %v1038_v47 = vmul.f32 %v1635_v21, %v1635_v21 }
  0xe0   :  { %v428_v26 = vpop.f32.mrf.mxu0  ;;  %v1974_v40 = vpop.f32.mrf.mxu1 }
  0xe1   :  { %v1097_v29 = vadd.f32 %v1096_v25, %v1034_v23  ;;  %v965_v30 = vadd.f32 %v1632_v8, %v964_v24  ;;  %v1036_v35 = vmul.f32 %v428_v26, %v428_v26 }
  0xe2   :  { %v1636_v32 = vpop.f32.mrf.mxu0  ;;  %v1976_v46 = vpop.f32.mrf.mxu1 }
  0xe3   :  { %v966_v34 = vadd.f32 %v965_v30, %v428_v26  ;;  %v1098_v36 = vadd.f32 %v1097_v29, %v1035_v28  ;;  %v1433_v37 = vpack.c.bf16 %v1636_v32, %v1635_v21  ;;  %v1039_v52 = vmul.f32 %v1636_v32, %v1636_v32 }
  0xe4   :  { %v431_v38 = vpop.f32.mrf.mxu0  ;;  %v1978_v51 = vpop.f32.mrf.mxu1 }
  0xe5   :  { %v1099_v41 = vadd.f32 %v1098_v36, %v1036_v35  ;;  %1561 = vst [vmem:[#allocation2 + $0x38] sm:$0xff] %v1433_v37   ;;  %v1428_v42 = vpack.c.bf16 %v431_v38, %v428_v26  ;;  %v967_v43 = vadd.f32 %v966_v34, %v431_v38  ;;  %v1037_v44 = vmul.f32 %v431_v38, %v431_v38 }
  0xe6   :  { %v1639_v45 = vpop.f32.mrf.mxu0  ;;  %v1503_v55 = vpack.c.bf16 %v1978_v51, %v1974_v40  ;;  %v1982_v58 = vpop.f32.mrf.mxu1 }
  0xe7   :  { %1560 = vst [vmem:[#allocation2 + $0x30] sm:$0xff] %v1428_v42   ;;  %v968_v48 = vadd.f32 %v1635_v21, %v967_v43  ;;  %v1100_v49 = vadd.f32 %v1099_v41, %v1037_v44  ;;  %v1498_v1 = vpack.c.bf16 %v1982_v58, %v1976_v46  ;;  %v1042_v11 = vmul.f32 %v1639_v45, %v1639_v45 }
  0xe8   :  { %v444_v50 = vpop.f32.mrf.mxu0  ;;  %1575 = vst [vmem:[#allocation2 + $0xa8] sm:$0xff] %v1503_v55   ;;  %v1986_v2 = vpop.f32.mrf.mxu1 }
  0xe9   :  { %v1101_v53 = vadd.f32 %v1100_v49, %v1038_v47  ;;  %v969_v54 = vadd.f32 %v1636_v32, %v968_v48  ;;  %v1040_v60 = vmul.f32 %v444_v50, %v444_v50  ;;  %1574 = vst [vmem:[#allocation2 + $0xa0] sm:$0xff] %v1498_v1  }
  0xea   :  { %v1640_v57 = vpop.f32.mrf.mxu0  ;;  %v1988_v10 = vpop.f32.mrf.mxu1 }
  0xeb   :  { %v970_v59 = vadd.f32 %v969_v54, %v444_v50  ;;  %v1102_v61 = vadd.f32 %v1101_v53, %v1039_v52  ;;  %v1443_v63 = vpack.c.bf16 %v1640_v57, %v1639_v45  ;;  %v1043_v17 = vmul.f32 %v1640_v57, %v1640_v57 }
  0xec   :  { %v447_v0 = vpop.f32.mrf.mxu0  ;;  %v1990_v15 = vpop.f32.mrf.mxu1 }
  0xed   :  { %v1103_v4 = vadd.f32 %v1102_v61, %v1040_v60  ;;  %1563 = vst [vmem:[#allocation2 + $0x48] sm:$0xff] %v1443_v63   ;;  %v1438_v5 = vpack.c.bf16 %v447_v0, %v444_v50  ;;  %v971_v6 = vadd.f32 %v970_v59, %v447_v0  ;;  %v1041_v7 = vmul.f32 %v447_v0, %v447_v0 }
  0xee   :  { %v1643_v8 = vpop.f32.mrf.mxu0  ;;  %v1513_v20 = vpack.c.bf16 %v1990_v15, %v1986_v2  ;;  %v1994_v23 = vpop.f32.mrf.mxu1 }
  0xef   :  { %1562 = vst [vmem:[#allocation2 + $0x40] sm:$0xff] %v1438_v5   ;;  %v972_v12 = vadd.f32 %v1639_v45, %v971_v6  ;;  %v1104_v13 = vadd.f32 %v1103_v4, %v1041_v7  ;;  %v1508_v30 = vpack.c.bf16 %v1994_v23, %v1988_v10  ;;  %v1046_v39 = vmul.f32 %v1643_v8, %v1643_v8 }
  0xf0   :  { %v460_v14 = vpop.f32.mrf.mxu0  ;;  %1577 = vst [vmem:[#allocation2 + $0xb8] sm:$0xff] %v1513_v20   ;;  %v1998_v31 = vpop.f32.mrf.mxu1 }
  0xf1   :  { %v1105_v18 = vadd.f32 %v1104_v13, %v1042_v11  ;;  %v973_v19 = vadd.f32 %v1640_v57, %v972_v12  ;;  %v1044_v25 = vmul.f32 %v460_v14, %v460_v14  ;;  %1576 = vst [vmem:[#allocation2 + $0xb0] sm:$0xff] %v1508_v30  }
  0xf2   :  { %v1644_v21 = vpop.f32.mrf.mxu0  ;;  %v2000_v38 = vpop.f32.mrf.mxu1 }
  0xf3   :  { %v974_v24 = vadd.f32 %v973_v19, %v460_v14  ;;  %v1106_v26 = vadd.f32 %v1105_v18, %v1043_v17  ;;  %v1453_v28 = vpack.c.bf16 %v1644_v21, %v1643_v8  ;;  %v1047_v45 = vmul.f32 %v1644_v21, %v1644_v21 }
  0xf4   :  { %v463_v29 = vpop.f32.mrf.mxu0  ;;  %v2002_v44 = vpop.f32.mrf.mxu1 }
  0xf5   :  { %v1107_v32 = vadd.f32 %v1106_v26, %v1044_v25  ;;  %1565 = vst [vmem:[#allocation2 + $0x58] sm:$0xff] %v1453_v28   ;;  %v1448_v34 = vpack.c.bf16 %v463_v29, %v460_v14  ;;  %v975_v35 = vadd.f32 %v974_v24, %v463_v29  ;;  %v1045_v36 = vmul.f32 %v463_v29, %v463_v29 }
  0xf6   :  { %v1647_v37 = vpop.f32.mrf.mxu0  ;;  %v1523_v49 = vpack.c.bf16 %v2002_v44, %v1998_v31  ;;  %v2006_v52 = vpop.f32.mrf.mxu1 }
  0xf7   :  { %1564 = vst [vmem:[#allocation2 + $0x50] sm:$0xff] %v1448_v34   ;;  %v976_v41 = vadd.f32 %v1643_v8, %v975_v35  ;;  %v1108_v42 = vadd.f32 %v1107_v32, %v1045_v36  ;;  %v1518_v60 = vpack.c.bf16 %v2006_v52, %v2000_v38  ;;  %v1050_v7 = vmul.f32 %v1647_v37, %v1647_v37 }
  0xf8   :  { %v476_v43 = vpop.f32.mrf.mxu0  ;;  %1579 = vst [vmem:[#allocation2 + $0xc8] sm:$0xff] %v1523_v49   ;;  %v2010_v61 = vpop.f32.mrf.mxu1 }
  0xf9   :  { %v1109_v47 = vadd.f32 %v1108_v42, %v1046_v39  ;;  %v977_v48 = vadd.f32 %v1644_v21, %v976_v41  ;;  %v1048_v54 = vmul.f32 %v476_v43, %v476_v43  ;;  %1578 = vst [vmem:[#allocation2 + $0xc0] sm:$0xff] %v1518_v60  }
  0xfa   :  { %v1648_v50 = vpop.f32.mrf.mxu0  ;;  %v2012_v6 = vpop.f32.mrf.mxu1 }
  0xfb   :  { %v978_v53 = vadd.f32 %v977_v48, %v476_v43  ;;  %v1110_v55 = vadd.f32 %v1109_v47, %v1047_v45  ;;  %v1463_v57 = vpack.c.bf16 %v1648_v50, %v1647_v37  ;;  %v1051_v14 = vmul.f32 %v1648_v50, %v1648_v50 }
  0xfc   :  { %v479_v59 = vpop.f32.mrf.mxu0  ;;  %v2014_v13 = vpop.f32.mrf.mxu1 }
  0xfd   :  { %v1111_v63 = vadd.f32 %v1110_v55, %v1048_v54  ;;  %1567 = vst [vmem:[#allocation2 + $0x68] sm:$0xff] %v1463_v57   ;;  %v1458_v0 = vpack.c.bf16 %v479_v59, %v476_v43  ;;  %v979_v1 = vadd.f32 %v978_v53, %v479_v59  ;;  %v1049_v4 = vmul.f32 %v479_v59, %v479_v59 }
  0xfe   :  { %v1651_v5 = vpop.f32.mrf.mxu0  ;;  %v1533_v19 = vpack.c.bf16 %v2014_v13, %v2010_v61  ;;  %v2018_v21 = vpop.f32.mrf.mxu1  ;;  %v1056_v54 = vmul.f32 %v1952_v62, %v1952_v62 }
  0xff   :  { %1566 = vst [vmem:[#allocation2 + $0x60] sm:$0xff] %v1458_v0   ;;  %v980_v8 = vadd.f32 %v1647_v37, %v979_v1  ;;  %v1112_v11 = vadd.f32 %v1111_v63, %v1049_v4  ;;  %v1528_v30 = vpack.c.bf16 %v2018_v21, %v2012_v6  ;;  %v1054_v41 = vmul.f32 %v1651_v5, %v1651_v5 }
 0x100   :  { %v492_v12 = vpop.f32.mrf.mxu0  ;;  %1581 = vst [vmem:[#allocation2 + $0xd8] sm:$0xff] %v1533_v19   ;;  %v2022_v32 = vpop.f32.mrf.mxu1  ;;  %v1057_v0 = vmul.f32 %v1958_v9, %v1958_v9 }
 0x101   :  { %v1113_v17 = vadd.f32 %v1112_v11, %v1050_v7  ;;  %v981_v18 = vadd.f32 %v1648_v50, %v980_v8  ;;  %v1052_v25 = vmul.f32 %v492_v12, %v492_v12  ;;  %1580 = vst [vmem:[#allocation2 + $0xd0] sm:$0xff] %v1528_v30   ;;  %v1059_v11 = vmul.f32 %v1954_v3, %v1954_v3 }
 0x102   :  { %v1652_v20 = vpop.f32.mrf.mxu0  ;;  %v2024_v39 = vpop.f32.mrf.mxu1 }
 0x103   :  { %v982_v24 = vadd.f32 %v981_v18, %v492_v12  ;;  %v1114_v26 = vadd.f32 %v1113_v17, %v1051_v14  ;;  %v1473_v28 = vpack.c.bf16 %v1652_v20, %v1651_v5  ;;  %v1055_v47 = vmul.f32 %v1652_v20, %v1652_v20 }
 0x104   :  { %v495_v29 = vpop.f32.mrf.mxu0  ;;  %v2026_v45 = vpop.f32.mrf.mxu1 }
 0x105   :  { %v1115_v34 = vadd.f32 %v1114_v26, %v1052_v25  ;;  %1569 = vst [vmem:[#allocation2 + $0x78] sm:$0xff] %v1473_v28   ;;  %v1468_v35 = vpack.c.bf16 %v495_v29, %v492_v12  ;;  %v983_v36 = vadd.f32 %v982_v24, %v495_v29  ;;  %v1053_v37 = vmul.f32 %v495_v29, %v495_v29 }
 0x106   :  { %v1543_v50 = vpack.c.bf16 %v2026_v45, %v2022_v32  ;;  %v2030_v53 = vpop.f32.mrf.mxu1 }
 0x107   :  { %1568 = vst [vmem:[#allocation2 + $0x70] sm:$0xff] %v1468_v35   ;;  %v984_v42 = vadd.f32 %v1651_v5, %v983_v36  ;;  %v1116_v43 = vadd.f32 %v1115_v34, %v1053_v37  ;;  %v1538_v59 = vpack.c.bf16 %v2030_v53, %v2024_v39  ;;  %v1058_v5 = vmul.f32 %v1950_v56, %v1950_v56 }
 0x108   :  { %1583 = vst [vmem:[#allocation2 + $0xe8] sm:$0xff] %v1543_v50   ;;  %v2037_v60 = vpop.f32.mrf.mxu1 }
 0x109   :  { %v985_v48 = vadd.f32 %v1652_v20, %v984_v42  ;;  %v1117_v49 = vadd.f32 %v1116_v43, %v1054_v41  ;;  %1582 = vst [vmem:[#allocation2 + $0xe0] sm:$0xff] %v1538_v59  }
 0x10a   :  { %v2042_v4 = vpop.f32.mrf.mxu1 }
 0x10b   :  { %v1118_v55 = vadd.f32 %v1117_v49, %v1055_v47  ;;  %v986_v57 = vadd.f32 %v985_v48, %v1952_v62 }
 0x10c   :  { %v2047_v8 = vpop.f32.mrf.mxu1 }
 0x10d   :  { %v987_v63 = vadd.f32 %v986_v57, %v1958_v9  ;;  %v1119_v1 = vadd.f32 %v1118_v55, %v1056_v54  ;;  %v1553_v14 = vpack.c.bf16 %v2047_v8, %v2037_v60 }
 0x10e   :  { %v2054_v17 = vpop.f32.mrf.mxu1 }
 0x10f   :  { %v988_v62 = vadd.f32 %v1950_v56, %v987_v63  ;;  %v1120_v7 = vadd.f32 %v1119_v1, %v1057_v0  ;;  %v1060_v56 = vmul.f32 %v1964_v22, %v1964_v22  ;;  %1585 = vst [vmem:[#allocation2 + $0xf8] sm:$0xff] %v1553_v14   ;;  %v1548_v20 = vpack.c.bf16 %v2054_v17, %v2042_v4 }
 0x111   :  { %v1121_v12 = vadd.f32 %v1120_v7, %v1058_v5  ;;  %v989_v9 = vadd.f32 %v1954_v3, %v988_v62  ;;  %v1061_v3 = vmul.f32 %v1970_v33, %v1970_v33  ;;  %1584 = vst [vmem:[#allocation2 + $0xf0] sm:$0xff] %v1548_v20  }
 0x113   :  { %v990_v18 = vadd.f32 %v989_v9, %v1964_v22  ;;  %v1122_v19 = vadd.f32 %v1121_v12, %v1059_v11 }
 0x115   :  { %v1123_v24 = vadd.f32 %v1122_v19, %v1060_v56  ;;  %v991_v25 = vadd.f32 %v990_v18, %v1970_v33 }
 0x116   :  { %1736 = shalt.err (!%p1733_p4)
}
 0x117   :  { %s1790_s28 = smov 64   ;;  %s1791_s29 = smov 4   ;;  %v1062_v22 = vmul.f32 %v1962_v16, %v1962_v16  ;;  %v992_v26 = vadd.f32 %v1962_v16, %v991_v25  ;;  %v1124_v33 = vadd.f32 %v1123_v24, %v1061_v3  ;;  %v1063_v28 = vmul.f32 %v1966_v27, %v1966_v27 }
 0x118   :  { %1170 = dma.vmem_to_hbm [thread:$0]  %s1165_s26, 4096, %s2153_s2, [#allocation3], %s1790_s28, %s1790_s28, %s1791_s29   ;;  %v1064_v35 = vmul.f32 %v1976_v46, %v1976_v46  ;;  %v1065_v42 = vmul.f32 %v1982_v58, %v1982_v58  ;;  %v1066_v16 = vmul.f32 %v1974_v40, %v1974_v40  ;;  %v1068_v50 = vmul.f32 %v1988_v10, %v1988_v10 }
 0x119   :  { %v1125_v29 = vadd.f32 %v1124_v33, %v1062_v22  ;;  %v993_v30 = vadd.f32 %v1966_v27, %v992_v26  ;;  %v1067_v27 = vmul.f32 %v1978_v51, %v1978_v51  ;;  %v1069_v57 = vmul.f32 %v1994_v23, %v1994_v23  ;;  %s1792_s2 = smov [#allocation4]   ;;  %s1793_s7 = smov [#allocation6]  }
 0x11a   :  { %v1072_v5 = vmul.f32 %v2000_v38, %v2000_v38  ;;  %v1073_v11 = vmul.f32 %v2006_v52, %v2006_v52  ;;  %v1076_v56 = vmul.f32 %v2012_v6, %v2012_v6  ;;  %v1077_v24 = vmul.f32 %v2018_v21, %v2018_v21  ;;  %s1177_s6 = sshll.u32 %s1792_s2, 4  ;;  %s1187_s8 = sshll.u32 %s1793_s7, 4  ;;  %s1178_s6 = int_to_ptr.vmem [resolvable:$true] %s1177_s6  ;;  %s1188_s8 = int_to_ptr.vmem [resolvable:$true] %s1187_s8 }
 0x11b   :  { %v994_v34 = vadd.f32 %v993_v30, %v1976_v46  ;;  %v1126_v36 = vadd.f32 %v1125_v29, %v1063_v28  ;;  %v1080_v33 = vmul.f32 %v2024_v39, %v2024_v39  ;;  %v1081_v30 = vmul.f32 %v2030_v53, %v2030_v53  ;;  %s1745_s9 = scalar_lea.vmem %s1178_s6, 128  ;;  %p1750_p6 = scmp.lt.s32.totalorder %s1178_s6, %s1178_s6 }
 0x11c   :  { %p1746_p5 = scmp.ne.s32.totalorder %s1178_s6, %s1745_s9  ;;  %p1751_p7 = scmp.lt.s32.totalorder %s1745_s9, %s1745_s9 }
 0x11d   :  { %v1127_v37 = vadd.f32 %v1126_v36, %v1064_v35  ;;  %v995_v41 = vadd.f32 %v994_v34, %v1982_v58 }
 0x11e   :  { %p1752_p8 = por %p1751_p7, %p1750_p6 }
 0x11f   :  { %v996_v43 = vadd.f32 %v1974_v40, %v995_v41  ;;  %v1128_v47 = vadd.f32 %v1127_v37, %v1065_v42  ;;  %v1070_v40 = vmul.f32 %v1986_v2, %v1986_v2  ;;  %v1084_v41 = vmul.f32 %v2042_v4, %v2042_v4 }
 0x120   :  { %p1753_p9 = pnand %p1752_p8, %p1746_p5 }
 0x121   :  { %v1129_v48 = vadd.f32 %v1128_v47, %v1066_v16  ;;  %v997_v49 = vadd.f32 %v1978_v51, %v996_v43  ;;  %v1071_v51 = vmul.f32 %v1990_v15, %v1990_v15  ;;  %v1085_v43 = vmul.f32 %v2054_v17, %v2054_v17 }
 0x123   :  { %v998_v46 = vadd.f32 %v997_v49, %v1988_v10  ;;  %v1130_v54 = vadd.f32 %v1129_v48, %v1067_v27 }
 0x125   :  { %v1131_v55 = vadd.f32 %v1130_v54, %v1068_v50  ;;  %v999_v58 = vadd.f32 %v998_v46, %v1994_v23 }
 0x127   :  { %v1000_v59 = vadd.f32 %v1986_v2, %v999_v58  ;;  %v1132_v63 = vadd.f32 %v1131_v55, %v1069_v57  ;;  %v1074_v2 = vmul.f32 %v1998_v31, %v1998_v31 }
 0x129   :  { %v1133_v0 = vadd.f32 %v1132_v63, %v1070_v40  ;;  %v1001_v1 = vadd.f32 %v1990_v15, %v1000_v59  ;;  %v1075_v15 = vmul.f32 %v2002_v44, %v2002_v44 }
 0x12b   :  { %v1002_v10 = vadd.f32 %v1001_v1, %v2000_v38  ;;  %v1134_v62 = vadd.f32 %v1133_v0, %v1071_v51 }
 0x12d   :  { %v1135_v7 = vadd.f32 %v1134_v62, %v1072_v5  ;;  %v1003_v23 = vadd.f32 %v1002_v10, %v2006_v52 }
 0x12f   :  { %v1004_v12 = vadd.f32 %v1998_v31, %v1003_v23  ;;  %v1136_v9 = vadd.f32 %v1135_v7, %v1073_v11  ;;  %v1078_v31 = vmul.f32 %v2010_v61, %v2010_v61 }
 0x131   :  { %v1137_v14 = vadd.f32 %v1136_v9, %v1074_v2  ;;  %v1005_v18 = vadd.f32 %v2002_v44, %v1004_v12  ;;  %v1079_v44 = vmul.f32 %v2014_v13, %v2014_v13 }
 0x133   :  { %v1006_v38 = vadd.f32 %v1005_v18, %v2012_v6  ;;  %v1138_v19 = vadd.f32 %v1137_v14, %v1075_v15 }
 0x135   :  { %v1139_v20 = vadd.f32 %v1138_v19, %v1076_v56  ;;  %v1007_v52 = vadd.f32 %v1006_v38, %v2018_v21 }
 0x137   :  { %v1008_v25 = vadd.f32 %v2010_v61, %v1007_v52  ;;  %v1140_v3 = vadd.f32 %v1139_v20, %v1077_v24  ;;  %v1082_v61 = vmul.f32 %v2022_v32, %v2022_v32 }
 0x139   :  { %v1141_v22 = vadd.f32 %v1140_v3, %v1078_v31  ;;  %v1009_v26 = vadd.f32 %v2014_v13, %v1008_v25  ;;  %v1083_v13 = vmul.f32 %v2026_v45, %v2026_v45 }
 0x13b   :  { %v1010_v6 = vadd.f32 %v1009_v26, %v2024_v39  ;;  %v1142_v28 = vadd.f32 %v1141_v22, %v1079_v44 }
 0x13d   :  { %v1143_v29 = vadd.f32 %v1142_v28, %v1080_v33  ;;  %v1011_v21 = vadd.f32 %v1010_v6, %v2030_v53 }
 0x13f   :  { %v1012_v34 = vadd.f32 %v2022_v32, %v1011_v21  ;;  %v1144_v35 = vadd.f32 %v1143_v29, %v1081_v30  ;;  %v1086_v32 = vmul.f32 %v2037_v60, %v2037_v60 }
 0x141   :  { %v1145_v36 = vadd.f32 %v1144_v35, %v1082_v61  ;;  %v1013_v37 = vadd.f32 %v2026_v45, %v1012_v34  ;;  %v1087_v45 = vmul.f32 %v2047_v8, %v2047_v8 }
 0x143   :  { %v1014_v39 = vadd.f32 %v1013_v37, %v2042_v4  ;;  %v1146_v42 = vadd.f32 %v1145_v36, %v1083_v13 }
 0x145   :  { %v1147_v16 = vadd.f32 %v1146_v42, %v1084_v41  ;;  %v1015_v53 = vadd.f32 %v1014_v39, %v2054_v17 }
 0x147   :  { %v1016_v47 = vadd.f32 %v2037_v60, %v1015_v53  ;;  %v1148_v27 = vadd.f32 %v1147_v16, %v1085_v43 }
 0x149   :  { %v1017_v48 = vadd.f32 %v2047_v8, %v1016_v47  ;;  %v1149_v49 = vadd.f32 %v1148_v27, %v1086_v32 }
 0x14b   :  { %v1018_v4 = vrot.slane %v1017_v48, 4  ;;  %v1150_v46 = vadd.f32 %v1149_v49, %v1087_v45 }
 0x14d   :  { %v1019_v50 = vadd.f32 %v1018_v4, %v1017_v48  ;;  %v1151_v54 = vrot.slane %v1150_v46, 4 }
 0x14f   :  { %v1020_v55 = vrot.slane %v1019_v50, 2  ;;  %v1152_v58 = vadd.f32 %v1151_v54, %v1150_v46 }
 0x151   :  { %v1021_v57 = vadd.f32 %v1020_v55, %v1019_v50  ;;  %v1153_v17 = vrot.slane %v1152_v58, 2 }
 0x153   :  { %v1022_v40 = vrot.slane %v1021_v57, 1  ;;  %v1154_v59 = vadd.f32 %v1153_v17, %v1152_v58 }
 0x155   :  { %v1023_v60 = vadd.f32 %v1022_v40, %v1021_v57  ;;  %v1155_v63 = vrot.slane %v1154_v59, 1 }
 0x157   :  { %1157 = vst [vmem:[#allocation4] sm:$0xff] %v1023_v60  ;;  %v1156_v8 = vadd.f32 %v1155_v63, %v1154_v59 }
 0x158   :  { %1756 = shalt.err (!%p1753_p9)
}
 0x159   :  { %1180 = dma.vmem_to_hbm [thread:$0]  %s1178_s6, 128, %s2154_s3, [#allocation5]   ;;  %1158 = vst [vmem:[#allocation6] sm:$0xff] %v1156_v8 }
 0x15a   :  { %s1765_s12 = scalar_lea.vmem %s1188_s8, 128  ;;  %p1770_p11 = scmp.lt.s32.totalorder %s1188_s8, %s1188_s8 }
 0x15b   :  { %p1766_p10 = scmp.ne.s32.totalorder %s1188_s8, %s1765_s12  ;;  %p1771_p12 = scmp.lt.s32.totalorder %s1765_s12, %s1765_s12 }
 0x15d   :  { %p1772_p13 = por %p1771_p12, %p1770_p11 }
 0x15f   :  { %p1773_p0 = pnand %p1772_p13, %p1766_p10 }
 0x161   :  { %1776 = shalt.err (!%p1773_p0)
}
 0x162   :  { %1190 = dma.vmem_to_hbm [thread:$0]  %s1188_s8, 128, %s2155_s4, [#allocation5]  }
 0x163   :  { %1785 = dma.done.wait [#allocation3], 4096  }
 0x164   :  { %1786 = vsyncadd [#allocation3], 4294963200 }
 0x165   :  { %1787 = dma.done.wait [#allocation5], 256  }
 0x166   :  { %1788 = vsyncadd [#allocation5], 4294967040 }
 0x167   :  { %1200 = vsyncpa [#allocation3], 1 }
 0x168   :  { %1201 = vsyncpa [#allocation5], 1 }

</bundles_post_ra>
